<compile_context>
chip_gen: v6e
topology: v6e:2x2x1
jax: 0.10.0
libtpu: 0.0.40
codegen_flags: <defaults>
</compile_context>

<pallas_src>
import jax
import jax.numpy as jnp
from jax import lax
from jax.experimental import pallas as pl
from jax.experimental.pallas import tpu as pltpu


def _dirsim_kernel(imgs_ref, txt_ref, wv_ref, wt_ref, out_ref):
    """Fused projection + normalize + directional cosine similarity.

    imgs_ref : [2*TB, Hv] pooled vision features; rows [0:TB] = image_one tile,
               rows [TB:2*TB] = image_two tile (interleaved by the wrapper)
    txt_ref  : [TB, Ht]   pooled text features (pre-projection)
    wv_ref   : [Hv, D]    visual_projection weight (VMEM-resident)
    wt_ref   : [Ht, D]    text_projection weight   (VMEM-resident)
    out_ref  : [1, 1, TB] directional similarity (lane-dense row)
    """
    tb = txt_ref.shape[0]

    # (1) ONE stacked projection matmul for both image batches (weights pushed
    #     to the MXU once, effective M doubled) + the text projection.
    f = jnp.dot(imgs_ref[...], wv_ref[...],
                preferred_element_type=jnp.float32)                      # [2*TB, D] f32
    t2 = jnp.dot(txt_ref[...], wt_ref[...],
                 preferred_element_type=jnp.float32)                     # [TB, D]  f32

    # (2) L2 normalize along dim=1 (feat / feat.norm(dim=1, keepdim=True)).
    #     rsqrt lands on the otherwise-idle EUP slot.  All math in f32.
    f = f * lax.rsqrt(jnp.sum(f * f, axis=1, keepdims=True))             # both imgs at once
    t2 = t2 * lax.rsqrt(jnp.sum(t2 * t2, axis=1, keepdims=True))

    # (3) cosine_similarity(f2 - f1, t2, dim=1, eps=1e-8).  ||t2|| == 1 after
    #     normalization so the text-norm factor is exactly 1.
    diff = f[tb:, :] - f[:tb, :]                                         # [TB, D]
    num = jnp.sum(diff * t2, axis=1, keepdims=True)                      # [TB, 1]
    dd = jnp.sum(diff * diff, axis=1, keepdims=True)                     # [TB, 1]
    # max(||diff||, 1e-8) == sqrt(max(dd, 1e-16))  ->  single EUP rsqrt.
    sim_col = num * lax.rsqrt(jnp.maximum(dd, 1e-16))

    # (4) Lane-dense writeback: turn the [TB, 1] column into a [1, TB] row via
    #     a masked cross-sublane reduction (avoids masked vst.msk partial
    #     stores on a last-dim-1 output).
    rows = lax.broadcasted_iota(jnp.int32, (tb, tb), 0)
    cols = lax.broadcasted_iota(jnp.int32, (tb, tb), 1)
    sim_row = jnp.sum(jnp.where(rows == cols, sim_col, 0.0),
                      axis=0, keepdims=True)                             # [1, TB]
    out_ref[...] = sim_row.reshape(1, 1, tb)


def _pad_axis(x, axis, multiple, value=0.0):
    size = x.shape[axis]
    target = ((size + multiple - 1) // multiple) * multiple
    if target == size:
        return x
    pad = [(0, 0)] * x.ndim
    pad[axis] = (0, target - size)
    return jnp.pad(x, pad, constant_values=value)


def directional_similarity(pooled_img_one, pooled_img_two, pooled_txt_two,
                           w_visual_proj, w_text_proj, *, tile_b=128):
    """Returns directional similarity of shape [B] (float32).

    Inputs may be bf16 (recommended on v6e/v7x: MXU runs at bf16 rate) or f32;
    all post-matmul math is done in f32 inside the kernel (v5e-safe).
    """
    B, _ = pooled_img_one.shape
    assert w_visual_proj.shape[1] == w_text_proj.shape[1]

    # Lane-axis padding to multiples of 128 (zero padding leaves matmuls exact).
    i1 = _pad_axis(pooled_img_one, 1, 128)
    i2 = _pad_axis(pooled_img_two, 1, 128)
    tx = _pad_axis(pooled_txt_two, 1, 128)
    wv = _pad_axis(_pad_axis(w_visual_proj, 0, 128), 1, 128)
    wt = _pad_axis(_pad_axis(w_text_proj, 0, 128), 1, 128)

    # Batch padding to a multiple of the batch tile.  Padded rows are filled
    # with ones (not zeros) so they produce finite (discarded) results.
    tb = tile_b
    i1 = _pad_axis(i1, 0, tb, value=1.0)
    i2 = _pad_axis(i2, 0, tb, value=1.0)
    tx = _pad_axis(tx, 0, tb, value=1.0)

    b_pad, hv_p = i1.shape
    ht_p = tx.shape[1]
    d_p = wv.shape[1]
    n_tiles = b_pad // tb

    # Interleave the two image batches per tile in the wrapper (one cheap XLA
    # reshape/concat outside the kernel) so each grid step DMAs a single
    # [2*tb, Hv] block and the kernel needs no concatenate.
    imgs = jnp.concatenate(
        [i1.reshape(n_tiles, tb, hv_p), i2.reshape(n_tiles, tb, hv_p)],
        axis=1).reshape(n_tiles * 2 * tb, hv_p)

    # VMEM budget: double-buffered input tiles + resident weights + f32
    # intermediates.  Clamped to stay inside every generation's physical VMEM.
    in_bytes = jnp.dtype(imgs.dtype).itemsize
    est = (2 * (2 * tb * hv_p + tb * ht_p) * in_bytes        # input tiles, x2 buffers
           + 2 * (hv_p + ht_p) * d_p * in_bytes              # weights (conservative x2)
           + 2 * tb * 4                                      # output tile
           + (4 * tb * d_p + tb * tb) * 4)                   # f32 intermediates
    vmem_limit = int(min(max(2 * est, 32 * 1024 * 1024), 48 * 1024 * 1024))

    out = pl.pallas_call(
        _dirsim_kernel,
        out_shape=jax.ShapeDtypeStruct((n_tiles, 1, tb), jnp.float32),
        grid=(n_tiles,),
        in_specs=[
            pl.BlockSpec((2 * tb, hv_p), lambda i: (i, 0)),
            pl.BlockSpec((tb, ht_p), lambda i: (i, 0)),
            pl.BlockSpec((hv_p, d_p), lambda i: (0, 0)),   # weights stay resident
            pl.BlockSpec((ht_p, d_p), lambda i: (0, 0)),
        ],
        out_specs=pl.BlockSpec((1, 1, tb), lambda i: (i, 0, 0)),
        compiler_params=pltpu.CompilerParams(
            dimension_semantics=("parallel",),
            vmem_limit_bytes=vmem_limit),
    )(imgs, tx, wv, wt)

    return out.reshape(-1)[:B]


def _reference(pooled_img_one, pooled_img_two, pooled_txt_two, wv, wt):
    """Pure-JAX reference of the same math (PyTorch semantics)."""
    f1 = jnp.dot(pooled_img_one, wv, preferred_element_type=jnp.float32)
    f2 = jnp.dot(pooled_img_two, wv, preferred_element_type=jnp.float32)
    t2 = jnp.dot(pooled_txt_two, wt, preferred_element_type=jnp.float32)
    f1 = f1 / jnp.linalg.norm(f1, axis=1, keepdims=True)
    f2 = f2 / jnp.linalg.norm(f2, axis=1, keepdims=True)
    t2 = t2 / jnp.linalg.norm(t2, axis=1, keepdims=True)
    diff = f2 - f1
    num = jnp.sum(diff * t2, axis=1)
    den = (jnp.maximum(jnp.linalg.norm(diff, axis=1), 1e-8) *
           jnp.maximum(jnp.linalg.norm(t2, axis=1), 1e-8))
    return num / den


if __name__ == "__main__":
    # Small CLIP-like (scaled-down) shapes:
    #   batch B=8, vision hidden Hv=64, text hidden Ht=64, joint embed dim D=128.
    B, Hv, Ht, D = 8, 64, 64, 128

    key = jax.random.PRNGKey(0)
    k1, k2, k3, k4, k5 = jax.random.split(key, 5)

    # bf16 matmul operands (v6e/v7x MXU rate); normalization stays f32 in-kernel.
    pooled_img_one = jax.random.normal(k1, (B, Hv), dtype=jnp.float32).astype(jnp.bfloat16)
    pooled_img_two = jax.random.normal(k2, (B, Hv), dtype=jnp.float32).astype(jnp.bfloat16)
    pooled_txt_two = jax.random.normal(k3, (B, Ht), dtype=jnp.float32).astype(jnp.bfloat16)

    # Deterministic synthetic projection weights (stand-ins for CLIP's
    # visual_projection / text_projection linear layers, no bias).
    w_visual_proj = (jax.random.normal(k4, (Hv, D), dtype=jnp.float32) * 0.05).astype(jnp.bfloat16)
    w_text_proj = (jax.random.normal(k5, (Ht, D), dtype=jnp.float32) * 0.05).astype(jnp.bfloat16)

    sim = directional_similarity(pooled_img_one, pooled_img_two,
                                 pooled_txt_two, w_visual_proj, w_text_proj)
    sim = jax.block_until_ready(sim)

    ref = _reference(pooled_img_one, pooled_img_two, pooled_txt_two,
                     w_visual_proj, w_text_proj)
    assert sim.shape == (B,)
    assert jnp.allclose(sim, ref, atol=1e-3, rtol=1e-3), (sim, ref)

    print("KERNEL_OK")
</pallas_src>

<mosaic_0001>
module attributes {stable_mosaic.version = 11 : i64} {
  func.func @_dirsim_kernel(%arg0: i32, %arg1: memref<256x128xbf16, #tpu.memory_space<vmem>>, %arg2: memref<128x128xbf16, #tpu.memory_space<vmem>>, %arg3: memref<128x128xbf16, #tpu.memory_space<vmem>>, %arg4: memref<128x128xbf16, #tpu.memory_space<vmem>>, %arg5: memref<1x1x128xf32, #tpu.memory_space<vmem>>) attributes {dimension_semantics = [#tpu.dimension_semantics<parallel>], iteration_bounds = array<i64: 1>, scalar_prefetch = 0 : i64, scratch_operands = 0 : i64, tpu.core_type = #tpu.core_type<tc>, window_params = [{transform_indices = @transform_0, window_bounds = array<i64: 256, 128>}, {transform_indices = @transform_1, window_bounds = array<i64: 128, 128>}, {pipeline_mode = #tpu.pipeline_mode<synchronous>, transform_indices = @transform_2, window_bounds = array<i64: 128, 128>}, {pipeline_mode = #tpu.pipeline_mode<synchronous>, transform_indices = @transform_3, window_bounds = array<i64: 128, 128>}, {transform_indices = @transform_4, window_bounds = array<i64: 1, 1, 128>}]} {
    %c0 = arith.constant 0 : index
    %c0_0 = arith.constant 0 : index
    %0 = vector.load %arg1[%c0, %c0_0] : memref<256x128xbf16, #tpu.memory_space<vmem>>, vector<256x128xbf16>
    %c0_1 = arith.constant 0 : index
    %c0_2 = arith.constant 0 : index
    %1 = vector.load %arg3[%c0_1, %c0_2] : memref<128x128xbf16, #tpu.memory_space<vmem>>, vector<128x128xbf16>
    %cst = arith.constant dense<0.000000e+00> : vector<256x128xf32>
    %2 = tpu.matmul %0, %1, %cst {dimension_numbers = #tpu.dot_dimension_numbers<[1], [0], [0], [1], [0, 0, 1, 1], [], []>} : vector<256x128xbf16>, vector<128x128xbf16>, vector<256x128xf32> -> vector<256x128xf32>
    %c0_3 = arith.constant 0 : index
    %c0_4 = arith.constant 0 : index
    %3 = vector.load %arg2[%c0_3, %c0_4] : memref<128x128xbf16, #tpu.memory_space<vmem>>, vector<128x128xbf16>
    %c0_5 = arith.constant 0 : index
    %c0_6 = arith.constant 0 : index
    %4 = vector.load %arg4[%c0_5, %c0_6] : memref<128x128xbf16, #tpu.memory_space<vmem>>, vector<128x128xbf16>
    %cst_7 = arith.constant dense<0.000000e+00> : vector<128x128xf32>
    %5 = tpu.matmul %3, %4, %cst_7 {dimension_numbers = #tpu.dot_dimension_numbers<[1], [0], [0], [1], [0, 0, 1, 1], [], []>} : vector<128x128xbf16>, vector<128x128xbf16>, vector<128x128xf32> -> vector<128x128xf32>
    %6 = arith.mulf %2, %2 : vector<256x128xf32>
    %cst_8 = arith.constant dense<0.000000e+00> : vector<256xf32>
    %7 = vector.multi_reduction <add>, %6, %cst_8 [1] : vector<256x128xf32> to vector<256xf32>
    %8 = vector.shape_cast %7 : vector<256xf32> to vector<256x1xf32>
    %9 = math.rsqrt %8 : vector<256x1xf32>
    %10 = vector.broadcast %9 : vector<256x1xf32> to vector<256x128xf32>
    %11 = arith.mulf %2, %10 : vector<256x128xf32>
    %12 = arith.mulf %5, %5 : vector<128x128xf32>
    %cst_9 = arith.constant dense<0.000000e+00> : vector<128xf32>
    %13 = vector.multi_reduction <add>, %12, %cst_9 [1] : vector<128x128xf32> to vector<128xf32>
    %14 = vector.shape_cast %13 : vector<128xf32> to vector<128x1xf32>
    %15 = math.rsqrt %14 : vector<128x1xf32>
    %16 = vector.broadcast %15 : vector<128x1xf32> to vector<128x128xf32>
    %17 = arith.mulf %5, %16 : vector<128x128xf32>
    %18 = vector.extract_strided_slice %11 {offsets = [128, 0], sizes = [128, 128], strides = [1, 1]} : vector<256x128xf32> to vector<128x128xf32>
    %19 = vector.extract_strided_slice %11 {offsets = [0, 0], sizes = [128, 128], strides = [1, 1]} : vector<256x128xf32> to vector<128x128xf32>
    %20 = arith.subf %18, %19 : vector<128x128xf32>
    %21 = arith.mulf %20, %17 : vector<128x128xf32>
    %cst_10 = arith.constant dense<0.000000e+00> : vector<128xf32>
    %22 = vector.multi_reduction <add>, %21, %cst_10 [1] : vector<128x128xf32> to vector<128xf32>
    %23 = vector.shape_cast %22 : vector<128xf32> to vector<128x1xf32>
    %24 = arith.mulf %20, %20 : vector<128x128xf32>
    %cst_11 = arith.constant dense<0.000000e+00> : vector<128xf32>
    %25 = vector.multi_reduction <add>, %24, %cst_11 [1] : vector<128x128xf32> to vector<128xf32>
    %26 = vector.shape_cast %25 : vector<128xf32> to vector<128x1xf32>
    %cst_12 = arith.constant 1.000000e-16 : f32
    %27 = vector.broadcast %cst_12 : f32 to vector<128x1xf32>
    %28 = arith.maximumf %26, %27 : vector<128x1xf32>
    %29 = math.rsqrt %28 : vector<128x1xf32>
    %30 = arith.mulf %23, %29 : vector<128x1xf32>
    %31 = tpu.iota {dimensions = array<i32: 0>} : vector<128x128xi32>
    %32 = tpu.iota {dimensions = array<i32: 1>} : vector<128x128xi32>
    %33 = arith.cmpi eq, %31, %32 : vector<128x128xi32>
    %cst_13 = arith.constant 0.000000e+00 : f32
    %34 = vector.shape_cast %30 : vector<128x1xf32> to vector<128x1xf32>
    %35 = vector.broadcast %34 : vector<128x1xf32> to vector<128x128xf32>
    %36 = vector.broadcast %cst_13 : f32 to vector<128x128xf32>
    %37 = arith.select %33, %35, %36 : vector<128x128xi1>, vector<128x128xf32>
    %cst_14 = arith.constant dense<0.000000e+00> : vector<128xf32>
    %38 = vector.multi_reduction <add>, %37, %cst_14 [0] : vector<128x128xf32> to vector<128xf32>
    %39 = vector.shape_cast %38 : vector<128xf32> to vector<1x128xf32>
    %40 = vector.shape_cast %39 : vector<1x128xf32> to vector<1x1x128xf32>
    %c0_15 = arith.constant 0 : index
    %c0_16 = arith.constant 0 : index
    %c0_17 = arith.constant 0 : index
    %41 = vector.load %arg5[%c0_15, %c0_16, %c0_17] : memref<1x1x128xf32, #tpu.memory_space<vmem>>, vector<1x1x128xf32>
    tpu.vector_store %arg5[%c0_15, %c0_16, %c0_17], %40 {strides = array<i32>} : memref<1x1x128xf32, #tpu.memory_space<vmem>>, vector<1x1x128xf32>,
    return
  }
  func.func @transform_0(%arg0: i32) -> (i32, i32) {
    %c0_i32 = arith.constant 0 : i32
    %c0_i32_0 = arith.constant 0 : i32
    return %arg0, %c0_i32 : i32, i32
  }
  func.func @transform_1(%arg0: i32) -> (i32, i32) {
    %c0_i32 = arith.constant 0 : i32
    %c0_i32_0 = arith.constant 0 : i32
    return %arg0, %c0_i32 : i32, i32
  }
  func.func @transform_2(%arg0: i32) -> (i32, i32) {
    %c0_i32 = arith.constant 0 : i32
    %c0_i32_0 = arith.constant 0 : i32
    %c0_i32_1 = arith.constant 0 : i32
    return %c0_i32, %c0_i32_0 : i32, i32
  }
  func.func @transform_3(%arg0: i32) -> (i32, i32) {
    %c0_i32 = arith.constant 0 : i32
    %c0_i32_0 = arith.constant 0 : i32
    %c0_i32_1 = arith.constant 0 : i32
    return %c0_i32, %c0_i32_0 : i32, i32
  }
  func.func @transform_4(%arg0: i32) -> (i32, i32, i32) {
    %c0_i32 = arith.constant 0 : i32
    %c0_i32_0 = arith.constant 0 : i32
    %c0_i32_1 = arith.constant 0 : i32
    return %arg0, %c0_i32, %c0_i32_0 : i32, i32, i32
  }
}

</mosaic_0001>

<bundles_post_ra>
// kernel: tpu_custom_call.1
= control target key start
LH: loop header
LB: loop body
LE: loop exit
PB: predicated region body
PF: predicated region fallthrough
CT: control target
= control target key end

     0   :  { %9 = vsyncpa [#allocation3], 0  ;;  %s1968_s0 = inlined_call_operand.hbm [shape: bf16[256,128], index: 0, kind: input, shape index: {}]   ;;  %s1969_s1 = inlined_call_operand.hbm [shape: bf16[128,128], index: 1, kind: input, shape index: {}]   ;;  %s1970_s2 = inlined_call_operand.hbm [shape: bf16[128,128], index: 2, kind: input, shape index: {}]   ;;  %s1971_s3 = inlined_call_operand.hbm [shape: bf16[128,128], index: 3, kind: input, shape index: {}]   ;;  %s1972_s4 = inlined_call_operand.hbm [shape: f32[1,1,128], index: 4, kind: output, shape index: {}]  }
   0x1   :  { %10 = vsyncpa [#allocation6], 0 }
   0x2   :  { %11 = vsyncpa [#allocation9], 0 }
   0x3   :  { %12 = vsyncpa [#allocation4], 0  ;;  %s1585_s15 = smov [#allocation5]   ;;  %s1586_s17 = smov [#allocation2]  }
   0x4   :  { %s30_s16 = sshll.u32 %s1585_s15, 4  ;;  %s18_s18 = sshll.u32 %s1586_s17, 4  ;;  %s31_s16 = int_to_ptr.vmem [resolvable:$true] %s30_s16  ;;  %s19_s18 = int_to_ptr.vmem [resolvable:$true] %s18_s18 }
   0x5   :  { %s1485_s19 = scalar_lea.vmem %s31_s16, 1024  ;;  %p1490_p1 = scmp.lt.s32.totalorder %s31_s16, %s31_s16 }
   0x6   :  { %p1486_p0 = scmp.ne.s32.totalorder %s31_s16, %s1485_s19  ;;  %p1491_p2 = scmp.lt.s32.totalorder %s1485_s19, %s1485_s19 }
   0x8   :  { %p1492_p3 = por %p1491_p2, %p1490_p1 }
   0xa   :  { %p1493_p4 = pnand %p1492_p3, %p1486_p0 }
   0xc   :  { %1496 = shalt.err (!%p1493_p4)
}
   0xd   :  { %s1587_s20 = smov 64   ;;  %s1588_s21 = smov 4  }
   0xe   :  { %36 = dma.hbm_to_vmem [thread:$0]  %s1969_s1, 1024, %s31_s16, [#allocation6], %s1587_s20, %s1587_s20, %s1588_s21  }
   0xf   :  { %s1505_s24 = scalar_lea.vmem %s19_s18, 2048  ;;  %p1510_p6 = scmp.lt.s32.totalorder %s19_s18, %s19_s18 }
  0x10   :  { %p1506_p5 = scmp.ne.s32.totalorder %s19_s18, %s1505_s24  ;;  %p1511_p7 = scmp.lt.s32.totalorder %s1505_s24, %s1505_s24 }
  0x12   :  { %p1512_p8 = por %p1511_p7, %p1510_p6 }
  0x14   :  { %p1513_p9 = pnand %p1512_p8, %p1506_p5 }
  0x16   :  { %1516 = shalt.err (!%p1513_p9)
}
  0x17   :  { %24 = dma.hbm_to_vmem [thread:$0]  %s1968_s0, 2048, %s19_s18, [#allocation3], %s1587_s20, %s1587_s20, %s1588_s21  }
  0x18   :  { %s1589_s27 = smov [#allocation7]   ;;  %s1590_s29 = smov [#allocation8]  }
  0x19   :  { %s42_s28 = sshll.u32 %s1589_s27, 4  ;;  %s54_s30 = sshll.u32 %s1590_s29, 4  ;;  %s43_s28 = int_to_ptr.vmem [resolvable:$true] %s42_s28  ;;  %s55_s30 = int_to_ptr.vmem [resolvable:$true] %s54_s30 }
  0x1a   :  { %s1525_s1 = scalar_lea.vmem %s43_s28, 1024  ;;  %p1530_p11 = scmp.lt.s32.totalorder %s43_s28, %s43_s28 }
  0x1b   :  { %p1526_p10 = scmp.ne.s32.totalorder %s43_s28, %s1525_s1  ;;  %p1531_p12 = scmp.lt.s32.totalorder %s1525_s1, %s1525_s1 }
  0x1d   :  { %p1532_p13 = por %p1531_p12, %p1530_p11 }
  0x1f   :  { %p1533_p0 = pnand %p1532_p13, %p1526_p10 }
  0x21   :  { %1536 = shalt.err (!%p1533_p0)
}
  0x22   :  { %48 = dma.hbm_to_vmem [thread:$0]  %s1970_s2, 1024, %s43_s28, [#allocation6], %s1587_s20, %s1587_s20, %s1588_s21  }
  0x23   :  { %s1545_s0 = scalar_lea.vmem %s55_s30, 1024  ;;  %p1550_p2 = scmp.lt.s32.totalorder %s55_s30, %s55_s30 }
  0x24   :  { %p1546_p1 = scmp.ne.s32.totalorder %s55_s30, %s1545_s0  ;;  %p1551_p3 = scmp.lt.s32.totalorder %s1545_s0, %s1545_s0 }
  0x26   :  { %p1552_p4 = por %p1551_p3, %p1550_p2 }
  0x28   :  { %p1553_p5 = pnand %p1552_p4, %p1546_p1 }
  0x2a   :  { %1556 = shalt.err (!%p1553_p5)
}
  0x2b   :  { %60 = dma.hbm_to_vmem [thread:$0]  %s1971_s3, 1024, %s55_s30, [#allocation9], %s1587_s20, %s1587_s20, %s1588_s21  }
  0x2c   :  { %1577 = dma.done.wait [#allocation3], 2048  }
  0x2d   :  { %1578 = vsyncadd [#allocation3], 4294965248 }
  0x2e   :  { %1579 = dma.done.wait [#allocation6], 2048  }
  0x2f   :  { %1580 = vsyncadd [#allocation6], 4294965248 }
  0x30   :  { %1581 = dma.done.wait [#allocation9], 1024  }
  0x31   :  { %1582 = vsyncadd [#allocation9], 4294966272  ;;  %v1309_v0 = vld [vmem:[#allocation7 + $0x38] sm:$0xff]   ;;  %v1311_v2 = vld [vmem:[#allocation7 + $0x30] sm:$0xff]   ;;  %s1591_s2 = smov [#allocation10]  }
  0x32   :  { %v1310_v1 = vld [vmem:[#allocation8 + $0x38] sm:$0xff]   ;;  %1222 = vmatprep.subr.bf16.mxu0 %v1309_v0  ;;  %v1312_v3 = vld [vmem:[#allocation8 + $0x30] sm:$0xff]   ;;  %v1313_v4 = vld [vmem:[#allocation7 + $0x28] sm:$0xff]   ;;  %s1131_s3 = sshll.u32 %s1591_s2, 4  ;;  %s1132_s3 = int_to_ptr.vmem [resolvable:$true] %s1131_s3 }
  0x33   :  { %1270 = vmatprep.subr.bf16.mxu1 %v1310_v1  ;;  %1223 = vmatpush3.bf16.msra.mxu0 %v1309_v0  ;;  %v1314_v5 = vld [vmem:[#allocation8 + $0x28] sm:$0xff]   ;;  %v1315_v6 = vld [vmem:[#allocation7 + $0x20] sm:$0xff]   ;;  %v1317_v8 = vld [vmem:[#allocation7 + $0x18] sm:$0xff]   ;;  %s1557_s9 = scalar_lea.vmem %s1132_s3, 16  ;;  %s1561_s10 = scalar_lea.vmem %s1132_s3, 32 }
  0x34   :  { %1271 = vmatpush3.bf16.msra.mxu1 %v1310_v1  ;;  %1224 = vmatprep.subr.bf16.mxu0 %v1311_v2  ;;  %v1316_v7 = vld [vmem:[#allocation8 + $0x20] sm:$0xff]   ;;  %v1318_v9 = vld [vmem:[#allocation8 + $0x18] sm:$0xff]   ;;  %v1319_v10 = vld [vmem:[#allocation7 + $0x10] sm:$0xff]   ;;  %p1558_p6 = scmp.ne.s32.totalorder %s1132_s3, %s1557_s9  ;;  %p1562_p7 = scmp.lt.s32.totalorder %s1132_s3, %s1132_s3 }
  0x35   :  { %1272 = vmatprep.subr.bf16.mxu1 %v1312_v3  ;;  %v1320_v11 = vld [vmem:[#allocation8 + $0x10] sm:$0xff]   ;;  %v1325_v12 = vld [vmem:[#allocation2] sm:$0xff]   ;;  %v1321_v14 = vld [vmem:[#allocation7 + $0x8] sm:$0xff]   ;;  %p1563_p8 = scmp.lt.s32.totalorder %s1561_s10, %s1557_s9 }
  0x36   :  { %v1326_v13 = vld [vmem:[#allocation5] sm:$0xff]   ;;  %1238 = vmatprep.mubr.bf16.mxu0 %v1325_v12  ;;  %v1322_v15 = vld [vmem:[#allocation8 + $0x8] sm:$0xff]   ;;  %v1329_v20 = vld [vmem:[#allocation2 + $0x10] sm:$0xff]  }
  0x37   :  { %1225 = vmatpush3.bf16.msra.mxu0 %v1311_v2  ;;  %1286 = vmatprep.mubr.bf16.mxu1 %v1326_v13  ;;  %v1323_v16 = vld [vmem:[#allocation7] sm:$0xff]   ;;  %v1327_v18 = vld [vmem:[#allocation2 + $0x8] sm:$0xff]   ;;  %v1335_v21 = vld [vmem:[#allocation5 + $0x10] sm:$0xff]   ;;  %p1564_p9 = por %p1563_p8, %p1562_p7 }
  0x38   :  { %1273 = vmatpush3.bf16.msra.mxu1 %v1312_v3  ;;  %1226 = vmatprep.subr.bf16.mxu0 %v1313_v4  ;;  %v1324_v17 = vld [vmem:[#allocation8] sm:$0xff]   ;;  %v1328_v19 = vld [vmem:[#allocation5 + $0x8] sm:$0xff]   ;;  %v1330_v22 = vld [vmem:[#allocation2 + $0x18] sm:$0xff]  }
  0x39   :  { %1274 = vmatprep.subr.bf16.mxu1 %v1314_v5  ;;  %v1331_v23 = vld [vmem:[#allocation2 + $0x20] sm:$0xff]   ;;  %v1336_v24 = vld [vmem:[#allocation5 + $0x18] sm:$0xff]   ;;  %v1332_v26 = vld [vmem:[#allocation2 + $0x28] sm:$0xff]   ;;  %p1565_p10 = pnand %p1564_p9, %p1558_p6 }
  0x3a   :  { %v1345_v25 = vld [vmem:[#allocation5 + $0x20] sm:$0xff]   ;;  %v1333_v27 = vld [vmem:[#allocation2 + $0x30] sm:$0xff]   ;;  %v1346_v28 = vld [vmem:[#allocation5 + $0x28] sm:$0xff]  }
  0x3b   :  { %1227 = vmatpush3.bf16.msra.mxu0 %v1313_v4  ;;  %v1347_v29 = vld [vmem:[#allocation5 + $0x30] sm:$0xff]   ;;  %v1334_v30 = vld [vmem:[#allocation2 + $0x38] sm:$0xff]   ;;  %v1337_v31 = vld [vmem:[#allocation2 + $0x40] sm:$0xff]  }
  0x3c   :  { %1275 = vmatpush3.bf16.msra.mxu1 %v1314_v5  ;;  %1228 = vmatprep.subr.bf16.mxu0 %v1315_v6  ;;  %v1348_v32 = vld [vmem:[#allocation5 + $0x38] sm:$0xff]   ;;  %v1338_v33 = vld [vmem:[#allocation2 + $0x48] sm:$0xff]   ;;  %v1339_v34 = vld [vmem:[#allocation2 + $0x50] sm:$0xff]  }
  0x3d   :  { %1276 = vmatprep.subr.bf16.mxu1 %v1316_v7  ;;  %v1340_v35 = vld [vmem:[#allocation2 + $0x58] sm:$0xff]   ;;  %v1341_v36 = vld [vmem:[#allocation2 + $0x60] sm:$0xff]   ;;  %v1342_v37 = vld [vmem:[#allocation2 + $0x68] sm:$0xff]  }
  0x3e   :  { %v1343_v38 = vld [vmem:[#allocation2 + $0x70] sm:$0xff]   ;;  %v1344_v39 = vld [vmem:[#allocation2 + $0x78] sm:$0xff]  }
  0x3f   :  { %1229 = vmatpush3.bf16.msra.mxu0 %v1315_v6 }
  0x40   :  { %1277 = vmatpush3.bf16.msra.mxu1 %v1316_v7  ;;  %1230 = vmatprep.subr.bf16.mxu0 %v1317_v8 }
  0x41   :  { %1278 = vmatprep.subr.bf16.mxu1 %v1318_v9 }
  0x43   :  { %1231 = vmatpush3.bf16.msra.mxu0 %v1317_v8 }
  0x44   :  { %1279 = vmatpush3.bf16.msra.mxu1 %v1318_v9  ;;  %1232 = vmatprep.subr.bf16.mxu0 %v1319_v10 }
  0x45   :  { %1280 = vmatprep.subr.bf16.mxu1 %v1320_v11 }
  0x47   :  { %1233 = vmatpush3.bf16.msra.mxu0 %v1319_v10 }
  0x48   :  { %1281 = vmatpush3.bf16.msra.mxu1 %v1320_v11  ;;  %1234 = vmatprep.subr.bf16.mxu0 %v1321_v14 }
  0x49   :  { %1282 = vmatprep.subr.bf16.mxu1 %v1322_v15 }
  0x4b   :  { %1235 = vmatpush3.bf16.msra.mxu0 %v1321_v14 }
  0x4c   :  { %1283 = vmatpush3.bf16.msra.mxu1 %v1322_v15  ;;  %1236 = vmatprep.subr.bf16.mxu0 %v1323_v16 }
  0x4d   :  { %1284 = vmatprep.subr.bf16.mxu1 %v1324_v17 }
  0x4f   :  { %1237 = vmatpush3.bf16.msra.mxu0 %v1323_v16 }
  0x50   :  { %1285 = vmatpush3.bf16.msra.mxu1 %v1324_v17 }
  0x52   :  { %1239 = vmatmul.mubr.bf16.vlgmr.msra.gmra.mxu0 %v1327_v18 }
  0x53   :  { %1287 = vmatmul.mubr.bf16.vlgmr.msra.gmra.mxu1 %v1328_v19  ;;  %1242 = vmatprep.mubr.bf16.mxu0 %v1329_v20 }
  0x54   :  { %1290 = vmatprep.mubr.bf16.mxu1 %v1335_v21 }
  0x5a   :  { %1243 = vmatmul.mubr.bf16.gmra.mxu0 %v1330_v22 }
  0x5b   :  { %1246 = vmatprep.mubr.bf16.mxu0 %v1331_v23  ;;  %1291 = vmatmul.mubr.bf16.gmra.mxu1 %v1336_v24 }
  0x5c   :  { %1294 = vmatprep.mubr.bf16.mxu1 %v1345_v25 }
  0x62   :  { %1247 = vmatmul.mubr.bf16.gmra.mxu0 %v1332_v26 }
  0x63   :  { %1250 = vmatprep.mubr.bf16.mxu0 %v1333_v27  ;;  %1295 = vmatmul.mubr.bf16.gmra.mxu1 %v1346_v28 }
  0x64   :  { %1298 = vmatprep.mubr.bf16.mxu1 %v1347_v29 }
  0x6a   :  { %1251 = vmatmul.mubr.bf16.gmra.mxu0 %v1334_v30 }
  0x6b   :  { %1254 = vmatprep.mubr.bf16.mxu0 %v1337_v31  ;;  %1299 = vmatmul.mubr.bf16.gmra.mxu1 %v1348_v32 }
  0x72   :  { %1255 = vmatmul.mubr.bf16.gmra.mxu0 %v1338_v33 }
  0x73   :  { %1258 = vmatprep.mubr.bf16.mxu0 %v1339_v34 }
  0x7a   :  { %1259 = vmatmul.mubr.bf16.gmra.mxu0 %v1340_v35 }
  0x7b   :  { %1262 = vmatprep.mubr.bf16.mxu0 %v1341_v36 }
  0x82   :  { %1263 = vmatmul.mubr.bf16.gmra.mxu0 %v1342_v37 }
  0x83   :  { %1266 = vmatprep.mubr.bf16.mxu0 %v1343_v38 }
  0x8a   :  { %1267 = vmatmul.mubr.bf16.gmra.mxu0 %v1344_v39 }
 0x112   :  { %v1641_v40 = vpop.f32.mrf.mxu0 }
 0x113   :  { %v1643_v41 = vpop.f32.mrf.mxu1  ;;  %v654_v42 = vmul.f32 %v1641_v40, %v1641_v40 }
 0x114   :  { %v1647_v43 = vpop.f32.mrf.mxu0  ;;  %v814_v45 = vmul.f32 %v1643_v41, %v1643_v41 }
 0x115   :  { %v1649_v44 = vpop.f32.mrf.mxu1  ;;  %688 = vadd.xlane.f32.xlu0 %v654_v42  ;;  %v652_v53 = vmul.f32 %v1647_v43, %v1647_v43 }
 0x116   :  { %v1653_v46 = vpop.f32.mrf.mxu0  ;;  %v812_v55 = vmul.f32 %v1649_v44, %v1649_v44 }
 0x117   :  { %v1655_v47 = vpop.f32.mrf.mxu1  ;;  %v655_v59 = vmul.f32 %v1653_v46, %v1653_v46 }
 0x118   :  { %v1657_v48 = vpop.f32.mrf.mxu0  ;;  %v815_v49 = vmul.f32 %v1655_v47, %v1655_v47 }
 0x119   :  { %832 = vadd.xlane.f32.xlu0 %v814_v45  ;;  %v1661_v50 = vpop.f32.mrf.mxu1  ;;  %v653_v62 = vmul.f32 %v1657_v48, %v1657_v48 }
 0x11a   :  { %834 = vadd.xlane.f32.xlu1 %v815_v49  ;;  %v1663_v51 = vpop.f32.mrf.mxu0  ;;  %v813_v52 = vmul.f32 %v1661_v50, %v1661_v50 }
 0x11b   :  { %v1691_v1 = vpop.f32.mrf.mxu1  ;;  %v658_v2 = vmul.f32 %v1663_v51, %v1663_v51 }
 0x11c   :  { %v1669_v54 = vpop.f32.mrf.mxu0 }
 0x11d   :  { %684 = vadd.xlane.f32.xlu0 %v652_v53  ;;  %v1701_v6 = vpop.f32.mrf.mxu1  ;;  %v656_v7 = vmul.f32 %v1669_v54, %v1669_v54 }
 0x11e   :  { %830 = vadd.xlane.f32.xlu1 %v813_v52  ;;  %v1673_v56 = vpop.f32.mrf.mxu0  ;;  %v816_v10 = vmul.f32 %v1701_v6, %v1701_v6 }
 0x11f   :  { %v659_v15 = vmul.f32 %v1673_v56, %v1673_v56  ;;  %v1761_v36 = vpop.f32.mrf.mxu1 }
 0x120   :  { %v1675_v57 = vpop.f32.mrf.mxu0  ;;  %1985 = vst [vmem:[#allocation16_spill] sm:$0xff] %v1761_v36 }
 0x121   :  { %828 = vadd.xlane.f32.xlu0 %v812_v55  ;;  %v657_v19 = vmul.f32 %v1675_v57, %v1675_v57  ;;  %v1769_v42 = vpop.f32.mrf.mxu1 }
 0x122   :  { %v1677_v58 = vpop.f32.mrf.mxu0 }
 0x123   :  { %v662_v23 = vmul.f32 %v1677_v58, %v1677_v58  ;;  %v1777_v53 = vpop.f32.mrf.mxu1 }
 0x124   :  { %v1681_v60 = vpop.f32.mrf.mxu0  ;;  %1986 = vst [vmem:[#allocation17_spill] sm:$0xff] %v1777_v53 }
 0x125   :  { %690 = vadd.xlane.f32.xlu0 %v655_v59  ;;  %v660_v28 = vmul.f32 %v1681_v60, %v1681_v60  ;;  %v1781_v59 = vpop.f32.mrf.mxu1 }
 0x126   :  { %v1683_v61 = vpop.f32.mrf.mxu0  ;;  %1987 = vst [vmem:[#allocation18_spill] sm:$0xff] %v1781_v59 }
 0x127   :  { %v663_v31 = vmul.f32 %v1683_v61, %v1683_v61 }
 0x128   :  { %v1687_v63 = vpop.f32.mrf.mxu0 }
 0x129   :  { %686 = vadd.xlane.f32.xlu0 %v653_v62  ;;  %v661_v34 = vmul.f32 %v1687_v63, %v1687_v63 }
 0x12a   :  { %v1689_v0 = vpop.f32.mrf.mxu0 }
 0x12b   :  { %v666_v3 = vmul.f32 %v1689_v0, %v1689_v0 }
 0x12c   :  { %v1697_v4 = vpop.f32.mrf.mxu0 }
 0x12d   :  { %696 = vadd.xlane.f32.xlu0 %v658_v2  ;;  %712 = vadd.xlane.f32.xlu1 %v666_v3  ;;  %v664_v8 = vmul.f32 %v1697_v4, %v1697_v4  ;;  %v1785_v2 = vpop.f32.mrf.mxu1 }
 0x12e   :  { %v1699_v5 = vpop.f32.mrf.mxu0  ;;  %1988 = vst [vmem:[#allocation19_spill] sm:$0xff] %v1785_v2 }
 0x12f   :  { %1984 = vst [vmem:[#allocation15_spill] sm:$0xff] %v1699_v5 }
 0x130   :  { %v1707_v9 = vpop.f32.mrf.mxu0 }
 0x131   :  { %692 = vadd.xlane.f32.xlu0 %v656_v7  ;;  %708 = vadd.xlane.f32.xlu1 %v664_v8  ;;  %v665_v38 = vmul.f32 %v1707_v9, %v1707_v9  ;;  %v667_v7 = vmul.f32 %v1699_v5, %v1699_v5  ;;  %v1791_v8 = vpop.f32.mrf.mxu1 }
 0x132   :  { %v1711_v11 = vpop.f32.mrf.mxu0  ;;  %1989 = vst [vmem:[#allocation20_spill] sm:$0xff] %v1791_v8 }
 0x133   :  { %v670_v12 = vmul.f32 %v1711_v11, %v1711_v11 }
 0x134   :  { %v1715_v13 = vpop.f32.mrf.mxu0 }
 0x135   :  { %836 = vadd.xlane.f32.xlu0 %v816_v10  ;;  %720 = vadd.xlane.f32.xlu1 %v670_v12  ;;  %v668_v16 = vmul.f32 %v1715_v13, %v1715_v13  ;;  %v818_v12 = vmul.f32 %v1691_v1, %v1691_v1 }
 0x136   :  { %v1717_v14 = vpop.f32.mrf.mxu0 }
 0x137   :  { %v671_v20 = vmul.f32 %v1717_v14, %v1717_v14 }
 0x138   :  { %v1723_v17 = vpop.f32.mrf.mxu0 }
 0x139   :  { %698 = vadd.xlane.f32.xlu0 %v659_v15  ;;  %716 = vadd.xlane.f32.xlu1 %v668_v16  ;;  %v669_v24 = vmul.f32 %v1723_v17, %v1723_v17  ;;  %v820_v16 = vmul.f32 %v1781_v59, %v1781_v59 }
 0x13a   :  { %v1725_v18 = vpop.f32.mrf.mxu0 }
 0x13b   :  { %v674_v26 = vmul.f32 %v1725_v18, %v1725_v18 }
 0x13c   :  { %v1731_v21 = vpop.f32.mrf.mxu0 }
 0x13d   :  { %694 = vadd.xlane.f32.xlu0 %v657_v19  ;;  %722 = vadd.xlane.f32.xlu1 %v671_v20  ;;  %v672_v32 = vmul.f32 %v1731_v21, %v1731_v21  ;;  %v1801_v19 = vpop.f32.mrf.mxu1  ;;  %v817_v20 = vmul.f32 %v1769_v42, %v1769_v42 }
 0x13e   :  { %v1733_v22 = vpop.f32.mrf.mxu0  ;;  %1991 = vst [vmem:[#allocation22_spill] sm:$0xff] %v1801_v19 }
 0x13f   :  { %v675_v35 = vmul.f32 %v1733_v22, %v1733_v22 }
 0x140   :  { %v1739_v25 = vpop.f32.mrf.mxu0 }
 0x141   :  { %704 = vadd.xlane.f32.xlu0 %v662_v23  ;;  %718 = vadd.xlane.f32.xlu1 %v669_v24  ;;  %v673_v39 = vmul.f32 %v1739_v25, %v1739_v25  ;;  %v822_v24 = vmul.f32 %v1777_v53, %v1777_v53 }
 0x142   :  { %v1743_v27 = vpop.f32.mrf.mxu0 }
 0x143   :  { %v678_v45 = vmul.f32 %v1743_v27, %v1743_v27 }
 0x144   :  { %v1747_v29 = vpop.f32.mrf.mxu0 }
 0x145   :  { %700 = vadd.xlane.f32.xlu0 %v660_v28  ;;  %728 = vadd.xlane.f32.xlu1 %v674_v26  ;;  %v676_v62 = vmul.f32 %v1747_v29, %v1747_v29  ;;  %v1809_v26 = vpop.f32.mrf.mxu1 }
 0x146   :  { %v1749_v30 = vpop.f32.mrf.mxu0  ;;  %1992 = vst [vmem:[#allocation23_spill] sm:$0xff] %v1809_v26 }
 0x147   :  { %v679_v3 = vmul.f32 %v1749_v30, %v1749_v30 }
 0x148   :  { %v1755_v33 = vpop.f32.mrf.mxu0 }
 0x149   :  { %706 = vadd.xlane.f32.xlu0 %v663_v31  ;;  %724 = vadd.xlane.f32.xlu1 %v672_v32  ;;  %v677_v10 = vmul.f32 %v1755_v33, %v1755_v33  ;;  %v824_v31 = vmul.f32 %v1809_v26, %v1809_v26 }
 0x14a   :  { %v1763_v37 = vpop.f32.mrf.mxu0 }
 0x14b   :  { %v682_v49 = vmul.f32 %v1763_v37, %v1763_v37 }
 0x14c   :  { %v1775_v52 = vpop.f32.mrf.mxu0 }
 0x14d   :  { %702 = vadd.xlane.f32.xlu0 %v661_v34  ;;  %730 = vadd.xlane.f32.xlu1 %v675_v35  ;;  %v680_v55 = vmul.f32 %v1775_v52, %v1775_v52  ;;  %v826_v34 = vmul.f32 %v1801_v19, %v1801_v19  ;;  %v819_v35 = vmul.f32 %v1761_v36, %v1761_v36 }
 0x14e   :  { %v1797_v15 = vpop.f32.mrf.mxu0 }
 0x14f   :  { %1990 = vst [vmem:[#allocation21_spill] sm:$0xff] %v1797_v15  ;;  %v683_v32 = vmul.f32 %v1797_v15, %v1797_v15 }
 0x150   :  { %v1805_v23 = vpop.f32.mrf.mxu0 }
 0x151   :  { %710 = vadd.xlane.f32.xlu0 %v665_v38  ;;  %726 = vadd.xlane.f32.xlu1 %v673_v39  ;;  %v681_v28 = vmul.f32 %v1805_v23, %v1805_v23  ;;  %v821_v38 = vmul.f32 %v1791_v8, %v1791_v8  ;;  %v1823_v39 = vpop.f32.mrf.mxu1 }
 0x152   :  { %1993 = vst [vmem:[#allocation24_spill] sm:$0xff] %v1823_v39 }
 0x155   :  { %736 = vadd.xlane.f32.xlu1 %v678_v45  ;;  %744 = vadd.xlane.f32.xlu0 %v682_v49  ;;  %v823_v45 = vmul.f32 %v1785_v2, %v1785_v2  ;;  %v1827_v49 = vpop.f32.mrf.mxu1 }
 0x156   :  { %1994 = vst [vmem:[#allocation25_spill] sm:$0xff] %v1827_v49 }
 0x159   :  { %732 = vadd.xlane.f32.xlu1 %v676_v62  ;;  %740 = vadd.xlane.f32.xlu0 %v680_v55  ;;  %v825_v55 = vmul.f32 %v1827_v49, %v1827_v49  ;;  %v827_v62 = vmul.f32 %v1823_v39, %v1823_v39 }
 0x15d   :  { %738 = vadd.xlane.f32.xlu1 %v679_v3  ;;  %714 = vadd.xlane.f32.xlu0 %v667_v7 }
 0x161   :  { %734 = vadd.xlane.f32.xlu1 %v677_v10  ;;  %840 = vadd.xlane.f32.xlu0 %v818_v12 }
 0x165   :  { %838 = vadd.xlane.f32.xlu1 %v817_v20  ;;  %844 = vadd.xlane.f32.xlu0 %v820_v16 }
 0x169   :  { %848 = vadd.xlane.f32.xlu0 %v822_v24  ;;  %742 = vadd.xlane.f32.xlu1 %v681_v28 }
 0x16d   :  { %852 = vadd.xlane.f32.xlu0 %v824_v31  ;;  %746 = vadd.xlane.f32.xlu1 %v683_v32 }
 0x171   :  { %856 = vadd.xlane.f32.xlu0 %v826_v34  ;;  %842 = vadd.xlane.f32.xlu1 %v819_v35 }
 0x175   :  { %846 = vadd.xlane.f32.xlu1 %v821_v38 }
 0x179   :  { %850 = vadd.xlane.f32.xlu1 %v823_v45 }
 0x17d   :  { %854 = vadd.xlane.f32.xlu1 %v825_v55 }
 0x181   :  { %858 = vadd.xlane.f32.xlu1 %v827_v62 }
 0x19e   :  { %v689_v3 = vpop.xlane.xlu0 %688 }
 0x19f   :  { %1349 = vrsqrt.f32 %v689_v3 }
 0x1a2   :  { %v833_v7 = vpop.xlane.xlu0 %832 }
 0x1a3   :  { %v835_v16 = vpop.xlane.xlu1 %834 }
 0x1a6   :  { %v685_v10 = vpop.xlane.xlu0 %684 }
 0x1a7   :  { %v831_v24 = vpop.xlane.xlu1 %830 }
 0x1aa   :  { %v829_v12 = vpop.xlane.xlu0 %828 }
 0x1ac   :  { %v1350_v2 = vpop.eup %1349 }
 0x1ae   :  { %v691_v20 = vpop.xlane.xlu0 %690 }
 0x1b2   :  { %v687_v28 = vpop.xlane.xlu0 %686 }
 0x1b6   :  { %v697_v31 = vpop.xlane.xlu0 %696  ;;  %v1833_v32 = vpop.xlane.xlu1 %712 }
 0x1ba   :  { %v693_v34 = vpop.xlane.xlu0 %692  ;;  %v1835_v35 = vpop.xlane.xlu1 %708 }
 0x1be   :  { %v1837_v38 = vpop.xlane.xlu0 %836  ;;  %v721_v45 = vpop.xlane.xlu1 %720 }
 0x1bf   :  { %1351 = vrsqrt.f32 %v721_v45 }
 0x1c0   :  { %1353 = vrsqrt.f32 %v833_v7 }
 0x1c1   :  { %1355 = vrsqrt.f32 %v685_v10  ;;  %v782_v10 = vmul.f32 %v1350_v2, %v1641_v40 }
 0x1c2   :  { %v699_v55 = vpop.xlane.xlu0 %698  ;;  %v717_v62 = vpop.xlane.xlu1 %716  ;;  %1357 = vrsqrt.f32 %v829_v12 }
 0x1c3   :  { %1359 = vrsqrt.f32 %v717_v62 }
 0x1c4   :  { %1361 = vrsqrt.f32 %v691_v20 }
 0x1c6   :  { %v695_v39 = vpop.xlane.xlu0 %694  ;;  %v723_v19 = vpop.xlane.xlu1 %722 }
 0x1c7   :  { %1363 = vrsqrt.f32 %v723_v19 }
 0x1c8   :  { %1365 = vrsqrt.f32 %v687_v28 }
 0x1c9   :  { %1367 = vrsqrt.f32 %v835_v16 }
 0x1ca   :  { %v705_v49 = vpop.xlane.xlu0 %704  ;;  %v719_v26 = vpop.xlane.xlu1 %718 }
 0x1cb   :  { %1369 = vrsqrt.f32 %v719_v26 }
 0x1cc   :  { %v1352_v3 = vpop.eup %1351  ;;  %1371 = vrsqrt.f32 %v831_v24 }
 0x1cd   :  { %v1354_v53 = vpop.eup %1353  ;;  %v798_v12 = vmul.f32 %v1352_v3, %v1711_v11  ;;  %1373 = vrsqrt.f32 %v697_v31 }
 0x1ce   :  { %v1839_v45 = vpop.xlane.xlu0 %700  ;;  %v729_v7 = vpop.xlane.xlu1 %728  ;;  %v878_v40 = vmul.f32 %v1354_v53, %v1643_v41 }
 0x1cf   :  { %v1356_v20 = vpop.eup %1355  ;;  %1375 = vrsqrt.f32 %v729_v7  ;;  %v894_v19 = vsub.f32 %v798_v12, %v782_v10 }
 0x1d0   :  { %v1358_v62 = vpop.eup %1357  ;;  %v780_v24 = vmul.f32 %v1356_v20, %v1647_v43  ;;  %1377 = vrsqrt.f32 %v693_v34 }
 0x1d1   :  { %v1360_v28 = vpop.eup %1359  ;;  %v958_v16 = vmul.f32 %v894_v19, %v894_v19  ;;  %v876_v11 = vmul.f32 %v1358_v62, %v1649_v44  ;;  %v910_v5 = vmul.f32 %v894_v19, %v878_v40 }
 0x1d2   :  { %v1362_v8 = vpop.eup %1361  ;;  %v1843_v59 = vpop.xlane.xlu0 %706  ;;  %v796_v36 = vmul.f32 %v1360_v28, %v1715_v13 }
 0x1d3   :  { %v725_v26 = vpop.xlane.xlu1 %724  ;;  %976 = vadd.xlane.f32.xlu0 %v958_v16  ;;  %v783_v3 = vmul.f32 %v1362_v8, %v1653_v46 }
 0x1d4   :  { %1379 = vrsqrt.f32 %v725_v26  ;;  %v892_v2 = vsub.f32 %v796_v36, %v780_v24  ;;  %v1364_v31 = vpop.eup %1363 }
 0x1d5   :  { %v1366_v7 = vpop.eup %1365  ;;  %1381 = vrsqrt.f32 %v699_v55  ;;  %v799_v43 = vmul.f32 %v1364_v31, %v1717_v14 }
 0x1d6   :  { %v703_v10 = vpop.xlane.xlu0 %702  ;;  %v908_v15 = vmul.f32 %v892_v2, %v876_v11  ;;  %v1368_v13 = vpop.eup %1367  ;;  %v781_v44 = vmul.f32 %v1366_v7, %v1657_v48  ;;  %v956_v53 = vmul.f32 %v892_v2, %v892_v2 }
 0x1d7   :  { %v731_v12 = vpop.xlane.xlu1 %730  ;;  %928 = vadd.xlane.f32.xlu0 %v910_v5  ;;  %v895_v34 = vsub.f32 %v799_v43, %v783_v3  ;;  %v879_v5 = vmul.f32 %v1368_v13, %v1655_v47 }
 0x1d8   :  { %1383 = vrsqrt.f32 %v731_v12  ;;  %924 = vadd.xlane.f32.xlu1 %v908_v15  ;;  %v1370_v41 = vpop.eup %1369 }
 0x1d9   :  { %1385 = vrsqrt.f32 %v695_v39  ;;  %v959_v8 = vmul.f32 %v895_v34, %v895_v34  ;;  %v797_v55 = vmul.f32 %v1370_v41, %v1723_v17  ;;  %v1372_v20 = vpop.eup %1371  ;;  %v911_v19 = vmul.f32 %v895_v34, %v879_v5 }
 0x1da   :  { %v1852_v36 = vpop.xlane.xlu0 %710  ;;  %1387 = vrsqrt.f32 %v1837_v38  ;;  %v1374_v14 = vpop.eup %1373  ;;  %v877_v38 = vmul.f32 %v1372_v20, %v1661_v50 }
 0x1db   :  { %v727_v46 = vpop.xlane.xlu1 %726  ;;  %972 = vadd.xlane.f32.xlu0 %v956_v53  ;;  %v893_v15 = vsub.f32 %v797_v55, %v781_v44  ;;  %v786_v16 = vmul.f32 %v1374_v14, %v1663_v51 }
 0x1dc   :  { %1389 = vrsqrt.f32 %v727_v46  ;;  %978 = vadd.xlane.f32.xlu1 %v959_v8  ;;  %v1376_v62 = vpop.eup %1375 }
 0x1dd   :  { %1391 = vrsqrt.f32 %v705_v49  ;;  %v957_v28 = vmul.f32 %v893_v15, %v893_v15  ;;  %v802_v26 = vmul.f32 %v1376_v62, %v1725_v18  ;;  %v1378_v17 = vpop.eup %1377  ;;  %v909_v49 = vmul.f32 %v893_v15, %v877_v38 }
 0x1de   :  { %v745_v39 = vpop.xlane.xlu0 %744  ;;  %v784_v18 = vmul.f32 %v1378_v17, %v1669_v54 }
 0x1df   :  { %v737_v48 = vpop.xlane.xlu1 %736  ;;  %930 = vadd.xlane.f32.xlu0 %v911_v19  ;;  %v1861_v11 = vsub.f32 %v802_v26, %v786_v16 }
 0x1e0   :  { %1393 = vrsqrt.f32 %v737_v48  ;;  %974 = vadd.xlane.f32.xlu1 %v957_v28 }
 0x1e1   :  { %v1380_v24 = vpop.eup %1379  ;;  %1395 = vrsqrt.f32 %v1839_v45  ;;  %v962_v45 = vmul.f32 %v1861_v11, %v1861_v11 }
 0x1e2   :  { %v741_v40 = vpop.xlane.xlu0 %740  ;;  %v800_v2 = vmul.f32 %v1380_v24, %v1731_v21  ;;  %v1382_v31 = vpop.eup %1381 }
 0x1e3   :  { %v733_v47 = vpop.xlane.xlu1 %732  ;;  %926 = vadd.xlane.f32.xlu0 %v909_v49  ;;  %v787_v12 = vmul.f32 %v1382_v31, %v1673_v56 }
 0x1e4   :  { %1397 = vrsqrt.f32 %v733_v47  ;;  %v896_v7 = vsub.f32 %v800_v2, %v784_v18 }
 0x1e5   :  { %1399 = vrsqrt.f32 %v1833_v32  ;;  %v1384_v50 = vpop.eup %1383 }
 0x1e6   :  { %1401 = vrsqrt.f32 %v1843_v59  ;;  %v715_v3 = vpop.xlane.xlu0 %714  ;;  %v803_v21 = vmul.f32 %v1384_v50, %v1733_v22  ;;  %v1386_v43 = vpop.eup %1385  ;;  %v960_v41 = vmul.f32 %v896_v7, %v896_v7 }
 0x1e7   :  { %v739_v51 = vpop.xlane.xlu1 %738  ;;  %v1388_v13 = vpop.eup %1387  ;;  %984 = vadd.xlane.f32.xlu0 %v962_v45  ;;  %v785_v46 = vmul.f32 %v1386_v43, %v1675_v57 }
 0x1e8   :  { %1403 = vrsqrt.f32 %v739_v51  ;;  %v1871_v32 = vsub.f32 %v803_v21, %v787_v12 }
 0x1e9   :  { %1405 = vrsqrt.f32 %v703_v10  ;;  %v1390_v54 = vpop.eup %1389  ;;  %v880_v10 = vmul.f32 %v1388_v13, %v1701_v6 }
 0x1ea   :  { %1407 = vrsqrt.f32 %v745_v39  ;;  %v1392_v59 = vpop.eup %1391  ;;  %v963_v44 = vmul.f32 %v1871_v32, %v1871_v32  ;;  %v801_v56 = vmul.f32 %v1390_v54, %v1739_v25  ;;  %v841_v22 = vpop.xlane.xlu0 %840 }
 0x1eb   :  { %v735_v34 = vpop.xlane.xlu1 %734  ;;  %980 = vadd.xlane.f32.xlu0 %v960_v41  ;;  %v790_v55 = vmul.f32 %v1392_v59, %v1677_v58  ;;  %v912_v5 = vmul.f32 %v896_v7, %v880_v10 }
 0x1ec   :  { %1409 = vrsqrt.f32 %v735_v34  ;;  %986 = vadd.xlane.f32.xlu1 %v963_v44  ;;  %v897_v8 = vsub.f32 %v801_v56, %v785_v46 }
 0x1ed   :  { %v1394_v53 = vpop.eup %1393  ;;  %1411 = vrsqrt.f32 %v1835_v35 }
 0x1ee   :  { %1413 = vrsqrt.f32 %v741_v40  ;;  %v806_v20 = vmul.f32 %v1394_v53, %v1743_v27  ;;  %v1396_v14 = vpop.eup %1395  ;;  %v961_v25 = vmul.f32 %v897_v8, %v897_v8  ;;  %v845_v19 = vpop.xlane.xlu0 %844 }
 0x1ef   :  { %1415 = vrsqrt.f32 %v841_v22  ;;  %v839_v57 = vpop.xlane.xlu1 %838  ;;  %932 = vadd.xlane.f32.xlu0 %v912_v5  ;;  %v788_v48 = vmul.f32 %v1396_v14, %v1681_v60  ;;  %v1996_v14 = vld [vmem:[#allocation15_spill] sm:$0xff] }
 0x1f0   :  { %1417 = vrsqrt.f32 %v839_v57  ;;  %v1881_v15 = vsub.f32 %v806_v20, %v790_v55  ;;  %982 = vadd.xlane.f32.xlu1 %v961_v25  ;;  %v1995_v55 = vld [vmem:[#allocation21_spill] sm:$0xff] }
 0x1f1   :  { %v1398_v62 = vpop.eup %1397  ;;  %1419 = vrsqrt.f32 %v1852_v36 }
 0x1f2   :  { %v1400_v35 = vpop.eup %1399  ;;  %v966_v6 = vmul.f32 %v1881_v15, %v1881_v15  ;;  %v804_v58 = vmul.f32 %v1398_v62, %v1747_v29  ;;  %v849_v49 = vpop.xlane.xlu0 %848  ;;  %v1997_v62 = vld [vmem:[#allocation16_spill] sm:$0xff] }
 0x1f3   :  { %v1402_v27 = vpop.eup %1401  ;;  %v743_v39 = vpop.xlane.xlu1 %742  ;;  %v794_v45 = vmul.f32 %v1400_v35, %v1689_v0 }
 0x1f4   :  { %v1888_v28 = vsub.f32 %v804_v58, %v788_v48  ;;  %1421 = vrsqrt.f32 %v743_v39  ;;  %992 = vadd.xlane.f32.xlu1 %v966_v6  ;;  %v791_v16 = vmul.f32 %v1402_v27, %v1683_v61  ;;  %v1998_v58 = vld [vmem:[#allocation18_spill] sm:$0xff] }
 0x1f5   :  { %v1404_v26 = vpop.eup %1403  ;;  %1423 = vrsqrt.f32 %v715_v3 }
 0x1f6   :  { %v1406_v17 = vpop.eup %1405  ;;  %v964_v38 = vmul.f32 %v1888_v28, %v1888_v28  ;;  %v807_v60 = vmul.f32 %v1404_v26, %v1749_v30  ;;  %v853_v13 = vpop.xlane.xlu0 %852  ;;  %v1999_v26 = vld [vmem:[#allocation20_spill] sm:$0xff] }
 0x1f7   :  { %v1408_v24 = vpop.eup %1407  ;;  %v747_v29 = vpop.xlane.xlu1 %746  ;;  %v789_v31 = vmul.f32 %v1406_v17, %v1687_v63 }
 0x1f8   :  { %988 = vadd.xlane.f32.xlu0 %v964_v38  ;;  %v1894_v47 = vsub.f32 %v807_v60, %v791_v16  ;;  %1425 = vrsqrt.f32 %v747_v29  ;;  %v810_v61 = vmul.f32 %v1408_v24, %v1763_v37  ;;  %v2000_v60 = vld [vmem:[#allocation17_spill] sm:$0xff] }
 0x1f9   :  { %v1410_v36 = vpop.eup %1409  ;;  %1427 = vrsqrt.f32 %v845_v19 }
 0x1fa   :  { %v1412_v40 = vpop.eup %1411  ;;  %v967_v2 = vmul.f32 %v1894_v47, %v1894_v47  ;;  %v805_v18 = vmul.f32 %v1410_v36, %v1755_v33  ;;  %v1903_v43 = vsub.f32 %v810_v61, %v794_v45  ;;  %v857_v22 = vpop.xlane.xlu0 %856 }
 0x1fb   :  { %v1414_v30 = vpop.eup %1413  ;;  %v843_v50 = vpop.xlane.xlu1 %842  ;;  %v792_v59 = vmul.f32 %v1412_v40, %v1697_v4  ;;  %v2001_v40 = vld [vmem:[#allocation19_spill] sm:$0xff] }
 0x1fc   :  { %v1416_v51 = vpop.eup %1415  ;;  %994 = vadd.xlane.f32.xlu1 %v967_v2  ;;  %v901_v3 = vsub.f32 %v805_v18, %v789_v31  ;;  %1429 = vrsqrt.f32 %v843_v50  ;;  %v808_v63 = vmul.f32 %v1414_v30, %v1775_v52  ;;  %v2002_v31 = vld [vmem:[#allocation23_spill] sm:$0xff]  ;;  %v2003_v50 = vld [vmem:[#allocation25_spill] sm:$0xff] }
 0x1fd   :  { %v1418_v7 = vpop.eup %1417  ;;  %v882_v54 = vmul.f32 %v1416_v51, %v1691_v1 }
 0x1fe   :  { %v965_v12 = vmul.f32 %v901_v3, %v901_v3  ;;  %v881_v21 = vmul.f32 %v1418_v7, %v1769_v42  ;;  %v1420_v34 = vpop.eup %1419  ;;  %v970_v42 = vmul.f32 %v1903_v43, %v1903_v43  ;;  %v904_v41 = vsub.f32 %v808_v63, %v792_v59  ;;  %v2004_v7 = vld [vmem:[#allocation22_spill] sm:$0xff] }
 0x1ff   :  { %v847_v33 = vpop.xlane.xlu1 %846  ;;  %v914_v46 = vmul.f32 %v1861_v11, %v882_v54  ;;  %v793_v56 = vmul.f32 %v1420_v34, %v1707_v9 }
 0x200   :  { %1431 = vrsqrt.f32 %v847_v33  ;;  %990 = vadd.xlane.f32.xlu1 %v965_v12  ;;  %v913_v37 = vmul.f32 %v897_v8, %v881_v21  ;;  %v968_v53 = vmul.f32 %v904_v41, %v904_v41  ;;  %v2005_v21 = vld [vmem:[#allocation24_spill] sm:$0xff] }
 0x201   :  { %1433 = vrsqrt.f32 %v849_v49  ;;  %v1422_v0 = vpop.eup %1421 }
 0x202   :  { %934 = vadd.xlane.f32.xlu0 %v913_v37  ;;  %v809_v52 = vmul.f32 %v1422_v0, %v1805_v23  ;;  %v1424_v1 = vpop.eup %1423 }
 0x203   :  { %v851_v44 = vpop.xlane.xlu1 %850  ;;  %v795_v23 = vmul.f32 %v1424_v1, %v1996_v14 }
 0x204   :  { %1435 = vrsqrt.f32 %v851_v44  ;;  %1000 = vadd.xlane.f32.xlu1 %v970_v42  ;;  %v905_v10 = vsub.f32 %v809_v52, %v793_v56 }
 0x205   :  { %1437 = vrsqrt.f32 %v853_v13  ;;  %v1426_v4 = vpop.eup %1425 }
 0x206   :  { %936 = vadd.xlane.f32.xlu0 %v914_v46  ;;  %v811_v20 = vmul.f32 %v1426_v4, %v1995_v55  ;;  %v1428_v57 = vpop.eup %1427  ;;  %v969_v11 = vmul.f32 %v905_v10, %v905_v10 }
 0x207   :  { %v855_v8 = vpop.xlane.xlu1 %854  ;;  %v884_v27 = vmul.f32 %v1428_v57, %v1998_v58 }
 0x208   :  { %1439 = vrsqrt.f32 %v855_v8  ;;  %996 = vadd.xlane.f32.xlu1 %v968_v53  ;;  %v907_v25 = vsub.f32 %v811_v20, %v795_v23  ;;  %v1052_v53 = vlaneseq }
 0x209   :  { %1441 = vrsqrt.f32 %v857_v22  ;;  %v1430_v5 = vpop.eup %1429  ;;  %v916_v16 = vmul.f32 %v1888_v28, %v884_v27 }
 0x20a   :  { %v883_v35 = vmul.f32 %v1430_v5, %v1997_v62  ;;  %v971_v19 = vmul.f32 %v907_v25, %v907_v25  ;;  %v1929_v55 = vshrl.u32 %v1052_v53, 7 }
 0x20b   :  { %v859_v9 = vpop.xlane.xlu1 %858 }
 0x20c   :  { %1443 = vrsqrt.f32 %v859_v9  ;;  %998 = vadd.xlane.f32.xlu1 %v969_v11  ;;  %v915_v48 = vmul.f32 %v1871_v32, %v883_v35  ;;  %v1054_v23 = vadd.s32 8, %v1929_v55  ;;  %v1055_v27 = vadd.s32 16, %v1929_v55 }
 0x20d   :  { %v1432_v6 = vpop.eup %1431 }
 0x20e   :  { %v1434_v39 = vpop.eup %1433  ;;  %v885_v17 = vmul.f32 %v1432_v6, %v1999_v26  ;;  %938 = vadd.xlane.f32.xlu0 %v915_v48 }
 0x20f   :  { %v886_v24 = vmul.f32 %v1434_v39, %v2000_v60 }
 0x210   :  { %1002 = vadd.xlane.f32.xlu1 %v971_v19  ;;  %v917_v36 = vmul.f32 %v901_v3, %v885_v17 }
 0x211   :  { %v1436_v38 = vpop.eup %1435  ;;  %v918_v2 = vmul.f32 %v1881_v15, %v886_v24 }
 0x212   :  { %v1438_v29 = vpop.eup %1437  ;;  %v887_v49 = vmul.f32 %v1436_v38, %v2001_v40  ;;  %940 = vadd.xlane.f32.xlu0 %v916_v16 }
 0x213   :  { %v888_v18 = vmul.f32 %v1438_v29, %v2002_v31  ;;  %v1058_v31 = vadd.s32 40, %v1929_v55 }
 0x214   :  { %942 = vadd.xlane.f32.xlu1 %v917_v36  ;;  %v919_v30 = vmul.f32 %v1894_v47, %v887_v49  ;;  %v1056_v36 = vadd.s32 24, %v1929_v55  ;;  %v1057_v49 = vadd.s32 32, %v1929_v55 }
 0x215   :  { %v1440_v32 = vpop.eup %1439  ;;  %v920_v45 = vmul.f32 %v904_v41, %v888_v18 }
 0x216   :  { %v1442_v61 = vpop.eup %1441  ;;  %v889_v51 = vmul.f32 %v1440_v32, %v2003_v50  ;;  %944 = vadd.xlane.f32.xlu0 %v918_v2 }
 0x217   :  { %v890_v3 = vmul.f32 %v1442_v61, %v2004_v7 }
 0x218   :  { %946 = vadd.xlane.f32.xlu1 %v919_v30  ;;  %v921_v12 = vmul.f32 %v905_v10, %v889_v51 }
 0x219   :  { %v1444_v28 = vpop.eup %1443  ;;  %v922_v15 = vmul.f32 %v1903_v43, %v890_v3 }
 0x21a   :  { %v891_v63 = vmul.f32 %v1444_v28, %v2005_v21  ;;  %948 = vadd.xlane.f32.xlu0 %v920_v45  ;;  %v1059_v45 = vadd.s32 48, %v1929_v55 }
 0x21c   :  { %950 = vadd.xlane.f32.xlu1 %v921_v12  ;;  %v923_v33 = vmul.f32 %v907_v25, %v891_v63  ;;  %v1932_v25 = vand.u32 127, %v1052_v53  ;;  %v1060_v63 = vadd.s32 56, %v1929_v55 }
 0x21e   :  { %952 = vadd.xlane.f32.xlu0 %v922_v15  ;;  %vm1072_vm0 = vcmp.eq.s32.totalorder %v1054_v23, %v1932_v25  ;;  %vm1071_vm1 = vcmp.eq.s32.totalorder %v1929_v55, %v1932_v25  ;;  %vm1073_vm2 = vcmp.eq.s32.totalorder %v1055_v27, %v1932_v25  ;;  %vm1074_vm3 = vcmp.eq.s32.totalorder %v1056_v36, %v1932_v25 }
 0x21f   :  { %vm1075_vm4 = vcmp.eq.s32.totalorder %v1057_v49, %v1932_v25  ;;  %vm1076_vm5 = vcmp.eq.s32.totalorder %v1058_v31, %v1932_v25  ;;  %vm1077_vm6 = vcmp.eq.s32.totalorder %v1059_v45, %v1932_v25  ;;  %vm1078_vm7 = vcmp.eq.s32.totalorder %v1060_v63, %v1932_v25 }
 0x220   :  { %954 = vadd.xlane.f32.xlu1 %v923_v33  ;;  %v1065_v27 = vadd.s32 96, %v1929_v55  ;;  %v1067_v49 = vadd.s32 112, %v1929_v55 }
 0x222   :  { %vm1083_vm12 = vcmp.eq.s32.totalorder %v1065_v27, %v1932_v25  ;;  %vm1085_vm14 = vcmp.eq.s32.totalorder %v1067_v49, %v1932_v25 }
 0x25c   :  { %v977_v13 = vpop.xlane.xlu0 %976 }
 0x25d   :  { %v1006_v56 = vmax.f32 %v977_v13, 1e-16 }
 0x260   :  { %v929_v47 = vpop.xlane.xlu0 %928 }
 0x261   :  { %v925_v37 = vpop.xlane.xlu1 %924 }
 0x264   :  { %v973_v54 = vpop.xlane.xlu0 %972 }
 0x265   :  { %v979_v59 = vpop.xlane.xlu1 %978  ;;  %v1004_v52 = vmax.f32 %v973_v54, 1e-16 }
 0x266   :  { %v1007_v4 = vmax.f32 %v979_v59, 1e-16 }
 0x268   :  { %v931_v34 = vpop.xlane.xlu0 %930 }
 0x269   :  { %v975_v42 = vpop.xlane.xlu1 %974 }
 0x26a   :  { %v1005_v41 = vmax.f32 %v975_v42, 1e-16 }
 0x26c   :  { %v927_v0 = vpop.xlane.xlu0 %926  ;;  %1445 = vrsqrt.f32 %v1005_v41 }
 0x26d   :  { %1447 = vrsqrt.f32 %v1004_v52 }
 0x26e   :  { %1449 = vrsqrt.f32 %v1006_v56 }
 0x26f   :  { %1451 = vrsqrt.f32 %v1007_v4 }
 0x270   :  { %v985_v44 = vpop.xlane.xlu0 %984 }
 0x271   :  { %v1010_v20 = vmax.f32 %v985_v44, 1e-16  ;;  %v1061_v44 = vadd.s32 64, %v1929_v55 }
 0x273   :  { %vm1079_vm8 = vcmp.eq.s32.totalorder %v1061_v44, %v1932_v25 }
 0x274   :  { %v981_v1 = vpop.xlane.xlu0 %980 }
 0x275   :  { %v987_v46 = vpop.xlane.xlu1 %986  ;;  %v1008_v22 = vmax.f32 %v981_v1, 1e-16  ;;  %v1062_v1 = vadd.s32 72, %v1929_v55 }
 0x276   :  { %v1011_v62 = vmax.f32 %v987_v46, 1e-16 }
 0x277   :  { %1453 = vrsqrt.f32 %v1008_v22  ;;  %vm1080_vm9 = vcmp.eq.s32.totalorder %v1062_v1, %v1932_v25 }
 0x278   :  { %v933_v57 = vpop.xlane.xlu0 %932 }
 0x279   :  { %v983_v43 = vpop.xlane.xlu1 %982  ;;  %v1446_v14 = vpop.eup %1445 }
 0x27a   :  { %v1009_v10 = vmax.f32 %v983_v43, 1e-16  ;;  %v1448_v11 = vpop.eup %1447  ;;  %v1037_v9 = vmul.f32 %v1446_v14, %v927_v0 }
 0x27b   :  { %v1036_v6 = vmul.f32 %v1448_v11, %v925_v37  ;;  %v1450_v58 = vpop.eup %1449 }
 0x27c   :  { %1455 = vrsqrt.f32 %v1009_v10  ;;  %v1088_v39 = vsel %vm1072_vm0, %v1037_v9, 0.0  ;;  %v1452_v38 = vpop.eup %1451  ;;  %v1038_v16 = vmul.f32 %v1450_v58, %v929_v47 }
 0x27d   :  { %v993_v8 = vpop.xlane.xlu1 %992  ;;  %1457 = vrsqrt.f32 %v1010_v20  ;;  %v1087_v60 = vsel %vm1071_vm1, %v1036_v6, 0.0  ;;  %v1039_v61 = vmul.f32 %v1452_v38, %v931_v34  ;;  %v1063_v20 = vadd.s32 80, %v1929_v55 }
 0x27e   :  { %1459 = vrsqrt.f32 %v1011_v62  ;;  %v1103_v40 = vadd.f32 %v1088_v39, %v1087_v60  ;;  %v1014_v32 = vmax.f32 %v993_v8, 1e-16  ;;  %v1089_v18 = vsel %vm1073_vm2, %v1038_v16, 0.0 }
 0x27f   :  { %v1090_v15 = vsel %vm1074_vm3, %v1039_v61, 0.0  ;;  %vm1081_vm10 = vcmp.eq.s32.totalorder %v1063_v20, %v1932_v25 }
 0x280   :  { %v1104_v28 = vadd.f32 %v1103_v40, %v1089_v18  ;;  %v1068_v18 = vadd.s32 120, %v1929_v55 }
 0x281   :  { %v989_v35 = vpop.xlane.xlu0 %988 }
 0x282   :  { %v1012_v19 = vmax.f32 %v989_v35, 1e-16  ;;  %v1105_v37 = vadd.f32 %v1104_v28, %v1090_v15  ;;  %vm1086_vm15 = vcmp.eq.s32.totalorder %v1068_v18, %v1932_v25 }
 0x284   :  { %v1454_v29 = vpop.eup %1453  ;;  %1461 = vrsqrt.f32 %v1012_v19 }
 0x285   :  { %v995_v5 = vpop.xlane.xlu1 %994  ;;  %v1040_v30 = vmul.f32 %v1454_v29, %v933_v57 }
 0x286   :  { %v1015_v2 = vmax.f32 %v995_v5, 1e-16  ;;  %v1064_v5 = vadd.s32 88, %v1929_v55 }
 0x287   :  { %v1091_v33 = vsel %vm1075_vm4, %v1040_v30, 0.0 }
 0x288   :  { %v1106_v42 = vadd.f32 %v1105_v37, %v1091_v33  ;;  %vm1082_vm11 = vcmp.eq.s32.totalorder %v1064_v5, %v1932_v25 }
 0x289   :  { %v991_v48 = vpop.xlane.xlu1 %990  ;;  %v1456_v51 = vpop.eup %1455 }
 0x28a   :  { %v1013_v26 = vmax.f32 %v991_v48, 1e-16  ;;  %v1458_v21 = vpop.eup %1457 }
 0x28b   :  { %v935_v17 = vpop.xlane.xlu0 %934  ;;  %v1460_v0 = vpop.eup %1459 }
 0x28c   :  { %1463 = vrsqrt.f32 %v1013_v26  ;;  %v1041_v3 = vmul.f32 %v1456_v51, %v935_v17  ;;  %v1066_v17 = vadd.s32 104, %v1929_v55 }
 0x28d   :  { %v1001_v24 = vpop.xlane.xlu1 %1000  ;;  %1465 = vrsqrt.f32 %v1014_v32 }
 0x28e   :  { %1467 = vrsqrt.f32 %v1015_v2  ;;  %v1092_v59 = vsel %vm1076_vm5, %v1041_v3, 0.0  ;;  %v1018_v34 = vmax.f32 %v1001_v24, 1e-16  ;;  %vm1084_vm13 = vcmp.eq.s32.totalorder %v1066_v17, %v1932_v25 }
 0x28f   :  { %v937_v7 = vpop.xlane.xlu0 %936  ;;  %v1107_v43 = vadd.f32 %v1106_v42, %v1092_v59 }
 0x290   :  { %v1042_v13 = vmul.f32 %v1458_v21, %v937_v7 }
 0x291   :  { %v997_v50 = vpop.xlane.xlu1 %996  ;;  %v1462_v53 = vpop.eup %1461 }
 0x292   :  { %v1016_v12 = vmax.f32 %v997_v50, 1e-16  ;;  %v1093_v52 = vsel %vm1077_vm6, %v1042_v13, 0.0 }
 0x293   :  { %v1108_v10 = vadd.f32 %v1107_v43, %v1093_v52 }
 0x294   :  { %1469 = vrsqrt.f32 %v1016_v12 }
 0x295   :  { %v999_v47 = vpop.xlane.xlu1 %998 }
 0x296   :  { %v1017_v54 = vmax.f32 %v999_v47, 1e-16 }
 0x297   :  { %v939_v41 = vpop.xlane.xlu0 %938 }
 0x298   :  { %1471 = vrsqrt.f32 %v1017_v54  ;;  %v1043_v46 = vmul.f32 %v1460_v0, %v939_v41 }
 0x299   :  { %v1003_v56 = vpop.xlane.xlu1 %1002  ;;  %1473 = vrsqrt.f32 %v1018_v34  ;;  %v1464_v14 = vpop.eup %1463 }
 0x29a   :  { %v1019_v4 = vmax.f32 %v1003_v56, 1e-16  ;;  %v1094_v22 = vsel %vm1078_vm7, %v1043_v46, 0.0  ;;  %v1466_v35 = vpop.eup %1465 }
 0x29b   :  { %v941_v8 = vpop.xlane.xlu0 %940  ;;  %v1109_v11 = vadd.f32 %v1108_v10, %v1094_v22  ;;  %v1468_v39 = vpop.eup %1467 }
 0x29c   :  { %1475 = vrsqrt.f32 %v1019_v4  ;;  %v1044_v23 = vmul.f32 %v1462_v53, %v941_v8 }
 0x29d   :  { %v943_v57 = vpop.xlane.xlu1 %942 }
 0x29e   :  { %v1045_v9 = vmul.f32 %v1464_v14, %v943_v57  ;;  %v1095_v62 = vsel %vm1079_vm8, %v1044_v23, 0.0 }
 0x29f   :  { %v1110_v6 = vadd.f32 %v1109_v11, %v1095_v62  ;;  %v945_v58 = vpop.xlane.xlu0 %944 }
 0x2a0   :  { %v1096_v48 = vsel %vm1080_vm9, %v1045_v9, 0.0  ;;  %v1046_v19 = vmul.f32 %v1466_v35, %v945_v58 }
 0x2a1   :  { %v947_v26 = vpop.xlane.xlu1 %946  ;;  %v1111_v38 = vadd.f32 %v1110_v6, %v1096_v48  ;;  %v1470_v24 = vpop.eup %1469 }
 0x2a2   :  { %v1047_v16 = vmul.f32 %v1468_v39, %v947_v26  ;;  %v1097_v60 = vsel %vm1081_vm10, %v1046_v19, 0.0 }
 0x2a3   :  { %v1112_v29 = vadd.f32 %v1111_v38, %v1097_v60  ;;  %v949_v40 = vpop.xlane.xlu0 %948 }
 0x2a4   :  { %v1098_v36 = vsel %vm1082_vm11, %v1047_v16, 0.0  ;;  %v1048_v2 = vmul.f32 %v1470_v24, %v949_v40 }
 0x2a5   :  { %v1472_v32 = vpop.eup %1471  ;;  %v951_v31 = vpop.xlane.xlu1 %950  ;;  %v1113_v61 = vadd.f32 %v1112_v29, %v1098_v36 }
 0x2a6   :  { %v1049_v30 = vmul.f32 %v1472_v32, %v951_v31  ;;  %v1099_v50 = vsel %vm1083_vm12, %v1048_v2, 0.0  ;;  %v1474_v51 = vpop.eup %1473 }
 0x2a7   :  { %v1114_v28 = vadd.f32 %v1113_v61, %v1099_v50  ;;  %v953_v7 = vpop.xlane.xlu0 %952 }
 0x2a8   :  { %v1100_v45 = vsel %vm1084_vm13, %v1049_v30, 0.0  ;;  %v1050_v12 = vmul.f32 %v1474_v51, %v953_v7 }
 0x2a9   :  { %v1476_v3 = vpop.eup %1475  ;;  %v955_v21 = vpop.xlane.xlu1 %954  ;;  %v1115_v63 = vadd.f32 %v1114_v28, %v1100_v45 }
 0x2aa   :  { %v1051_v15 = vmul.f32 %v1476_v3, %v955_v21  ;;  %v1101_v33 = vsel %vm1085_vm14, %v1050_v12, 0.0 }
 0x2ab   :  { %v1116_v13 = vadd.f32 %v1115_v63, %v1101_v33 }
 0x2ac   :  { %v1102_v47 = vsel %vm1086_vm15, %v1051_v15, 0.0 }
 0x2ad   :  { %v1117_v55 = vadd.f32 %v1116_v13, %v1102_v47 }
 0x2af   :  { %v1118_v37 = vrot.slane %v1117_v55, 4 }
 0x2b1   :  { %v1119_v54 = vadd.f32 %v1118_v37, %v1117_v55 }
 0x2b3   :  { %v1120_v59 = vrot.slane %v1119_v54, 2 }
 0x2b5   :  { %v1121_v34 = vadd.f32 %v1120_v59, %v1119_v54 }
 0x2b7   :  { %v1122_v0 = vrot.slane %v1121_v34, 1 }
 0x2b9   :  { %v1123_v42 = vadd.f32 %v1122_v0, %v1121_v34 }
 0x2bb   :  { %1124 = vst [vmem:[#allocation10] sm:$0x1] %v1123_v42 }
 0x2bc   :  { %1568 = shalt.err (!%p1565_p10)
}
 0x2bd   :  { %1134 = dma.vmem_to_hbm [thread:$0]  %s1132_s3, 16, %s1972_s4, [#allocation4]  }
 0x2be   :  { %1583 = dma.done.wait [#allocation4], 16  }
 0x2bf   :  { %1584 = vsyncadd [#allocation4], 4294967280 }
 0x2c0   :  { %1138 = vsyncpa [#allocation3], 1 }
 0x2c1   :  { %1139 = vsyncpa [#allocation6], 1 }
 0x2c2   :  { %1140 = vsyncpa [#allocation9], 1 }
 0x2c3   :  { %1141 = vsyncpa [#allocation4], 1 }

</bundles_post_ra>
